<compile_context>
chip_gen: v5e
topology: v5e:2x2
jax: 0.10.0
libtpu: 0.0.40
codegen_flags: <defaults>
</compile_context>

<pallas_src>
import functools

import jax
import jax.numpy as jnp
import numpy as np
from jax.experimental import pallas as pl
from jax.experimental.pallas import tpu as pltpu

IN_DIM = 128      # decoder input width (x_dict['stroke'] feature dim)
HIDDEN = 256      # hidden_channels
MID = 64          # second hidden width
MID_PAD = 128     # 64 padded to a full lane width


def _round_up(n, m):
    return ((n + m - 1) // m) * m


def extrude_decoder_kernel(x_ref, w1_ref, b1_ref, w2_ref, b2_ref,
                           w3_ref, b3_ref, out_ref):
    # x_ref  : (TM, 128)   f32  (cast to bf16 in-kernel)
    # w1_ref : (128, 256)  bf16    b1_ref : (1, 256)  f32
    # w2_ref : (256, 128)  bf16    b2_ref : (1, 128)  f32  (cols >= 64 are zero)
    # w3_ref : (1, 128)    f32     b3_ref : (1, 1)    f32  (cols >= 64 are zero)
    # out_ref: (TM, 1)     f32     compact store, no lane padding
    x = x_ref[...].astype(jnp.bfloat16)            # VPU cast, hidden under MXU

    h1 = jnp.dot(x, w1_ref[...], preferred_element_type=jnp.float32) + b1_ref[...]
    h1 = jnp.maximum(h1, 0.0)                      # ReLU (f32)

    h2 = (jnp.dot(h1.astype(jnp.bfloat16), w2_ref[...],
                  preferred_element_type=jnp.float32) + b2_ref[...])
    h2 = jnp.maximum(h2, 0.0)                      # (TM, 128); padded cols stay 0

    # Layer 3 (64 -> 1): VPU multiply + XLU lane-reduce instead of a padded
    # 128x128 matmul; padded weight/activation columns contribute exactly 0.
    logits = jnp.sum(h2 * w3_ref[...], axis=-1, keepdims=True) + b3_ref[...]
    out_ref[...] = jax.nn.sigmoid(logits)          # (TM, 1)


def prepare_decoder_params(params):
    """One-time packing: PyTorch (out, in) -> (in, out), lane padding, bf16 weights."""
    w2p = jnp.zeros((HIDDEN, MID_PAD), jnp.bfloat16).at[:, :MID].set(
        params["w2"].T.astype(jnp.bfloat16))                                   # (256, 128)
    b2p = jnp.zeros((1, MID_PAD), jnp.float32).at[0, :MID].set(params["b2"])   # (1, 128)
    w3p = jnp.zeros((1, MID_PAD), jnp.float32).at[0, :MID].set(params["w3"][0])  # (1, 128)
    return dict(
        w1=params["w1"].T.astype(jnp.bfloat16),                                # (128, 256)
        b1=params["b1"][None, :].astype(jnp.float32),                          # (1, 256)
        w2=w2p, b2=b2p, w3=w3p,
        b3=params["b3"].reshape(1, 1).astype(jnp.float32),                     # (1, 1)
    )


def _forward(x, packed):
    N = x.shape[0]
    if N <= 128:
        TM = max(8, _round_up(N, 8))               # f32 input: 8-row sublane multiple
    else:
        # >= 2 grid steps whenever N > 128 so ("parallel",) shards across v7x's
        # two TensorCores; cap the tile at 512 rows (VMEM use stays tiny since
        # the weights are grid-invariant / resident).
        TM = min(512, _round_up(pl.cdiv(N, 2), 128))
    Np = _round_up(N, TM)
    grid = (Np // TM,)

    # Only pad the ragged tail; no extra pad/cast pass when N is tile-aligned.
    x_in = x if Np == N else jnp.pad(x, ((0, Np - N), (0, 0)))

    flops = 2 * Np * (IN_DIM * HIDDEN + HIDDEN * MID_PAD + MID_PAD)
    bytes_accessed = (Np * (IN_DIM * 4 + 4)                      # x in, logits out
                      + (IN_DIM * HIDDEN + HIDDEN * MID_PAD) * 2  # bf16 weights
                      + (HIDDEN + MID_PAD + MID_PAD + 1) * 4)     # biases + w3 row

    out = pl.pallas_call(
        extrude_decoder_kernel,
        out_shape=jax.ShapeDtypeStruct((Np, 1), jnp.float32),
        grid=grid,
        in_specs=[
            pl.BlockSpec((TM, IN_DIM), lambda i: (i, 0)),        # x tile
            pl.BlockSpec((IN_DIM, HIDDEN), lambda i: (0, 0)),    # w1
            pl.BlockSpec((1, HIDDEN), lambda i: (0, 0)),         # b1
            pl.BlockSpec((HIDDEN, MID_PAD), lambda i: (0, 0)),   # w2 (lane-padded)
            pl.BlockSpec((1, MID_PAD), lambda i: (0, 0)),        # b2
            pl.BlockSpec((1, MID_PAD), lambda i: (0, 0)),        # w3 row (lane-padded)
            pl.BlockSpec((1, 1), lambda i: (0, 0)),              # b3
        ],
        out_specs=pl.BlockSpec((TM, 1), lambda i: (i, 0)),
        compiler_params=pltpu.CompilerParams(
            dimension_semantics=("parallel",)),
        cost_estimate=pl.CostEstimate(
            flops=flops, transcendentals=Np, bytes_accessed=bytes_accessed),
    )(x_in, packed["w1"], packed["b1"], packed["w2"], packed["b2"],
      packed["w3"], packed["b3"])

    return out[:N] if Np != N else out             # (N, 1), matches PyTorch


_forward_jit = jax.jit(_forward)


def extrude_decoder(x_dict, packed_params):
    """Mirrors Extrude_Decoder.forward: sigmoid(MLP(x_dict['stroke'])) -> (N, 1)."""
    return _forward_jit(x_dict["stroke"], packed_params)


def init_params(key):
    """PyTorch nn.Linear default init: U(-1/sqrt(fan_in), 1/sqrt(fan_in)), (out, in) layout."""
    ks = jax.random.split(key, 6)

    def u(k, shape, fan_in):
        s = 1.0 / np.sqrt(fan_in)
        return jax.random.uniform(k, shape, jnp.float32, -s, s)

    return dict(
        w1=u(ks[0], (HIDDEN, IN_DIM), IN_DIM), b1=u(ks[1], (HIDDEN,), IN_DIM),
        w2=u(ks[2], (MID, HIDDEN), HIDDEN),    b2=u(ks[3], (MID,), HIDDEN),
        w3=u(ks[4], (1, MID), MID),            b3=u(ks[5], (1,), MID),
    )


def reference(x, params):
    """Pure-JAX f32 reference mirroring the PyTorch forward (eval mode)."""
    h1 = jnp.maximum(x @ params["w1"].T + params["b1"], 0.0)
    h2 = jnp.maximum(h1 @ params["w2"].T + params["b2"], 0.0)
    return jax.nn.sigmoid(h2 @ params["w3"].T + params["b3"])


if __name__ == "__main__":
    key = jax.random.PRNGKey(0)
    k_par, k_x = jax.random.split(key)
    params = init_params(k_par)
    packed = prepare_decoder_params(params)        # one-time weight packing

    N = 16
    x = jax.random.normal(k_x, (N, IN_DIM), jnp.float32)
    x_dict = {"stroke": x}

    out = jax.block_until_ready(extrude_decoder(x_dict, packed))
    ref = jax.block_until_ready(reference(x, params))

    assert out.shape == (N, 1)
    np.testing.assert_allclose(np.asarray(out), np.asarray(ref),
                               rtol=2e-2, atol=2e-2)
    print("KERNEL_OK")
</pallas_src>

<mosaic_0001>
module attributes {stable_mosaic.version = 11 : i64} {
  func.func @extrude_decoder_kernel(%arg0: i32, %arg1: memref<16x128xf32, #tpu.memory_space<vmem>>, %arg2: memref<128x256xbf16, #tpu.memory_space<vmem>>, %arg3: memref<1x256xf32, #tpu.memory_space<vmem>>, %arg4: memref<256x128xbf16, #tpu.memory_space<vmem>>, %arg5: memref<1x128xf32, #tpu.memory_space<vmem>>, %arg6: memref<1x128xf32, #tpu.memory_space<vmem>>, %arg7: memref<1x1xf32, #tpu.memory_space<vmem>>, %arg8: memref<16x1xf32, #tpu.memory_space<vmem>>) attributes {dimension_semantics = [#tpu.dimension_semantics<parallel>], iteration_bounds = array<i64: 1>, scalar_prefetch = 0 : i64, scratch_operands = 0 : i64, tpu.core_type = #tpu.core_type<tc>, window_params = [{transform_indices = @transform_0, window_bounds = array<i64: 16, 128>}, {pipeline_mode = #tpu.pipeline_mode<synchronous>, transform_indices = @transform_1, window_bounds = array<i64: 128, 256>}, {pipeline_mode = #tpu.pipeline_mode<synchronous>, transform_indices = @transform_2, window_bounds = array<i64: 1, 256>}, {pipeline_mode = #tpu.pipeline_mode<synchronous>, transform_indices = @transform_3, window_bounds = array<i64: 256, 128>}, {pipeline_mode = #tpu.pipeline_mode<synchronous>, transform_indices = @transform_4, window_bounds = array<i64: 1, 128>}, {pipeline_mode = #tpu.pipeline_mode<synchronous>, transform_indices = @transform_5, window_bounds = array<i64: 1, 128>}, {pipeline_mode = #tpu.pipeline_mode<synchronous>, transform_indices = @transform_6, window_bounds = array<i64: 1, 1>}, {transform_indices = @transform_7, window_bounds = array<i64: 16, 1>}]} {
    %c0 = arith.constant 0 : index
    %c0_0 = arith.constant 0 : index
    %0 = vector.load %arg1[%c0, %c0_0] : memref<16x128xf32, #tpu.memory_space<vmem>>, vector<16x128xf32>
    %1 = arith.truncf %0 : vector<16x128xf32> to vector<16x128xbf16>
    %c0_1 = arith.constant 0 : index
    %c0_2 = arith.constant 0 : index
    %2 = vector.load %arg2[%c0_1, %c0_2] : memref<128x256xbf16, #tpu.memory_space<vmem>>, vector<128x256xbf16>
    %cst = arith.constant dense<0.000000e+00> : vector<16x256xf32>
    %3 = tpu.matmul %1, %2, %cst {dimension_numbers = #tpu.dot_dimension_numbers<[1], [0], [0], [1], [0, 0, 1, 1], [], []>} : vector<16x128xbf16>, vector<128x256xbf16>, vector<16x256xf32> -> vector<16x256xf32>
    %c0_3 = arith.constant 0 : index
    %c0_4 = arith.constant 0 : index
    %4 = vector.load %arg3[%c0_3, %c0_4] : memref<1x256xf32, #tpu.memory_space<vmem>>, vector<1x256xf32>
    %5 = vector.broadcast %4 : vector<1x256xf32> to vector<16x256xf32>
    %6 = arith.addf %3, %5 : vector<16x256xf32>
    %cst_5 = arith.constant 0.000000e+00 : f32
    %7 = vector.broadcast %cst_5 : f32 to vector<16x256xf32>
    %8 = arith.maximumf %6, %7 : vector<16x256xf32>
    %9 = arith.truncf %8 : vector<16x256xf32> to vector<16x256xbf16>
    %c0_6 = arith.constant 0 : index
    %c0_7 = arith.constant 0 : index
    %10 = vector.load %arg4[%c0_6, %c0_7] : memref<256x128xbf16, #tpu.memory_space<vmem>>, vector<256x128xbf16>
    %cst_8 = arith.constant dense<0.000000e+00> : vector<16x128xf32>
    %11 = tpu.matmul %9, %10, %cst_8 {dimension_numbers = #tpu.dot_dimension_numbers<[1], [0], [0], [1], [0, 0, 1, 1], [], []>} : vector<16x256xbf16>, vector<256x128xbf16>, vector<16x128xf32> -> vector<16x128xf32>
    %c0_9 = arith.constant 0 : index
    %c0_10 = arith.constant 0 : index
    %12 = vector.load %arg5[%c0_9, %c0_10] : memref<1x128xf32, #tpu.memory_space<vmem>>, vector<1x128xf32>
    %13 = vector.broadcast %12 : vector<1x128xf32> to vector<16x128xf32>
    %14 = arith.addf %11, %13 : vector<16x128xf32>
    %cst_11 = arith.constant 0.000000e+00 : f32
    %15 = vector.broadcast %cst_11 : f32 to vector<16x128xf32>
    %16 = arith.maximumf %14, %15 : vector<16x128xf32>
    %c0_12 = arith.constant 0 : index
    %c0_13 = arith.constant 0 : index
    %17 = vector.load %arg6[%c0_12, %c0_13] : memref<1x128xf32, #tpu.memory_space<vmem>>, vector<1x128xf32>
    %18 = vector.broadcast %17 : vector<1x128xf32> to vector<16x128xf32>
    %19 = arith.mulf %16, %18 : vector<16x128xf32>
    %cst_14 = arith.constant dense<0.000000e+00> : vector<16xf32>
    %20 = vector.multi_reduction <add>, %19, %cst_14 [1] : vector<16x128xf32> to vector<16xf32>
    %21 = vector.shape_cast %20 : vector<16xf32> to vector<16x1xf32>
    %c0_15 = arith.constant 0 : index
    %c0_16 = arith.constant 0 : index
    %22 = vector.load %arg7[%c0_15, %c0_16] : memref<1x1xf32, #tpu.memory_space<vmem>>, vector<1x1xf32>
    %23 = vector.broadcast %22 : vector<1x1xf32> to vector<16x1xf32>
    %24 = arith.addf %21, %23 : vector<16x1xf32>
    %25 = arith.negf %24 : vector<16x1xf32>
    %26 = math.exp %25 : vector<16x1xf32>
    %cst_17 = arith.constant 1.000000e+00 : f32
    %27 = vector.broadcast %cst_17 : f32 to vector<16x1xf32>
    %28 = arith.addf %27, %26 : vector<16x1xf32>
    %29 = arith.divf %27, %28 : vector<16x1xf32>
    %c0_18 = arith.constant 0 : index
    %c0_19 = arith.constant 0 : index
    %30 = vector.load %arg8[%c0_18, %c0_19] : memref<16x1xf32, #tpu.memory_space<vmem>>, vector<16x1xf32>
    tpu.vector_store %arg8[%c0_18, %c0_19], %29 {strides = array<i32>} : memref<16x1xf32, #tpu.memory_space<vmem>>, vector<16x1xf32>,
    return
  }
  func.func @transform_0(%arg0: i32) -> (i32, i32) {
    %c0_i32 = arith.constant 0 : i32
    %c0_i32_0 = arith.constant 0 : i32
    return %arg0, %c0_i32 : i32, i32
  }
  func.func @transform_1(%arg0: i32) -> (i32, i32) {
    %c0_i32 = arith.constant 0 : i32
    %c0_i32_0 = arith.constant 0 : i32
    %c0_i32_1 = arith.constant 0 : i32
    return %c0_i32, %c0_i32_0 : i32, i32
  }
  func.func @transform_2(%arg0: i32) -> (i32, i32) {
    %c0_i32 = arith.constant 0 : i32
    %c0_i32_0 = arith.constant 0 : i32
    %c0_i32_1 = arith.constant 0 : i32
    return %c0_i32, %c0_i32_0 : i32, i32
  }
  func.func @transform_3(%arg0: i32) -> (i32, i32) {
    %c0_i32 = arith.constant 0 : i32
    %c0_i32_0 = arith.constant 0 : i32
    %c0_i32_1 = arith.constant 0 : i32
    return %c0_i32, %c0_i32_0 : i32, i32
  }
  func.func @transform_4(%arg0: i32) -> (i32, i32) {
    %c0_i32 = arith.constant 0 : i32
    %c0_i32_0 = arith.constant 0 : i32
    %c0_i32_1 = arith.constant 0 : i32
    return %c0_i32, %c0_i32_0 : i32, i32
  }
  func.func @transform_5(%arg0: i32) -> (i32, i32) {
    %c0_i32 = arith.constant 0 : i32
    %c0_i32_0 = arith.constant 0 : i32
    %c0_i32_1 = arith.constant 0 : i32
    return %c0_i32, %c0_i32_0 : i32, i32
  }
  func.func @transform_6(%arg0: i32) -> (i32, i32) {
    %c0_i32 = arith.constant 0 : i32
    %c0_i32_0 = arith.constant 0 : i32
    %c0_i32_1 = arith.constant 0 : i32
    return %c0_i32, %c0_i32_0 : i32, i32
  }
  func.func @transform_7(%arg0: i32) -> (i32, i32) {
    %c0_i32 = arith.constant 0 : i32
    %c0_i32_0 = arith.constant 0 : i32
    return %arg0, %c0_i32 : i32, i32
  }
}

</mosaic_0001>

<bundles_post_ra>
// kernel: _forward.1
= control target key start
LH: loop header
LB: loop body
LE: loop exit
PB: predicated region body
PF: predicated region fallthrough
CT: control target
= control target key end

     0   :  { %s771_s0 = inlined_call_operand.hbm [shape: f32[16,128], index: 0, kind: input, shape index: {}]   ;;  %s772_s1 = inlined_call_operand.hbm [shape: bf16[128,256], index: 1, kind: input, shape index: {}]   ;;  %s773_s2 = inlined_call_operand.vmem [shape: f32[1,256], index: 2, kind: input, shape index: {}]   ;;  %s774_s3 = inlined_call_operand.hbm [shape: bf16[256,128], index: 3, kind: input, shape index: {}]   ;;  %s775_s4 = inlined_call_operand.vmem [shape: f32[1,128], index: 4, kind: input, shape index: {}]   ;;  %s776_s5 = inlined_call_operand.vmem [shape: f32[1,128], index: 5, kind: input, shape index: {}]   ;;  %s777_s6 = inlined_call_operand.<no memory space> [shape: f32[1,1], index: 6, kind: input, shape index: {}]   ;;  %s778_s7 = inlined_call_operand.vmem [shape: f32[16,1], index: 7, kind: output, shape index: {}]  }
   0x1   :  { %v12_v0 = vstv %s777_s6 }
   0x2   :  { %13 = vst [vmem:[#allocation2] sm:$0x1] %v12_v0 }
   0x3   :  { %14 = vsyncpa [#allocation4], 0 }
   0x4   :  { %15 = vsyncpa [#allocation6], 0  ;;  %s33_s28 = sshll.u32 %s772_s1, 4  ;;  %s695_s29 = smov [#allocation5]   ;;  %s34_s28 = int_to_ptr.hbm [resolvable:$true] %s33_s28 }
   0x5   :  { %s35_s30 = sshll.u32 %s695_s29, 4  ;;  %s20_s10 = sshll.u32 %s771_s0, 4  ;;  %s36_s30 = int_to_ptr.vmem [resolvable:$true] %s35_s30  ;;  %s21_s10 = int_to_ptr.hbm [resolvable:$true] %s20_s10 }
   0x6   :  { %s696_s11 = smov 128   ;;  %s697_s12 = smov 8  }
   0x7   :  { %41 = dma.hbm_to_vmem [thread:$0]  %s34_s28, 2048, %s36_s30, [#allocation6], %s696_s11, %s696_s11, %s697_s12  }
   0x8   :  { %s698_s6 = smov [#allocation3]   ;;  %s48_s16 = sshll.u32 %s774_s3, 4  ;;  %s49_s16 = int_to_ptr.hbm [resolvable:$true] %s48_s16 }
   0x9   :  { %s22_s13 = sshll.u32 %s698_s6, 4  ;;  %s699_s1 = smov [#allocation7]   ;;  %s23_s13 = int_to_ptr.vmem [resolvable:$true] %s22_s13 }
   0xa   :  { %28 = dma.hbm_to_vmem [thread:$0]  %s21_s10, 256, %s23_s13, [#allocation4], %s696_s11, %s696_s11, %s697_s12  }
   0xb   :  { %s50_s17 = sshll.u32 %s699_s1, 4  ;;  %s700_s18 = smov 64   ;;  %s51_s17 = int_to_ptr.vmem [resolvable:$true] %s50_s17 }
   0xc   :  { %s701_s19 = smov 4  }
   0xd   :  { %56 = dma.hbm_to_vmem [thread:$0]  %s49_s16, 2048, %s51_s17, [#allocation6], %s700_s18, %s700_s18, %s701_s19  }
   0xe   :  { %691 = dma.done.wait [#allocation4], 256  }
   0xf   :  { %692 = vsyncadd [#allocation4], 4294967040 }
  0x10   :  { %693 = dma.done.wait [#allocation6], 4096  }
  0x11   :  { %694 = vsyncadd [#allocation6], 4294963200  ;;  %v497_v1 = vld [vmem:[#allocation5 + $0x70] sm:$0xf]  ;;  %v584_v2 = vld [vmem:[#allocation5 + $0x74] sm:$0xf0] }
  0x12   :  { %v583_v3 = vld [vmem:[#allocation5 + $0x74] sm:$0xf]  ;;  %v498_v4 = vor.u32 %v584_v2, %v497_v1  ;;  %v499_v5 = vld [vmem:[#allocation5 + $0x78] sm:$0xf0]  ;;  %v489_v6 = vld [vmem:[#allocation5 + $0x60] sm:$0xf] }
  0x13   :  { %v582_v7 = vld [vmem:[#allocation5 + $0x64] sm:$0xf0]  ;;  %v502_v8 = vor.u32 %v583_v3, %v499_v5  ;;  %v581_v9 = vld [vmem:[#allocation5 + $0x64] sm:$0xf]  ;;  %v491_v10 = vld [vmem:[#allocation5 + $0x68] sm:$0xf0] }
  0x14   :  { %180 = vmatpush.bf16.msra.mxu0 %v498_v4  ;;  %v490_v11 = vor.u32 %v582_v7, %v489_v6  ;;  %v494_v12 = vor.u32 %v581_v9, %v491_v10  ;;  %v481_v13 = vld [vmem:[#allocation5 + $0x50] sm:$0xf]  ;;  %v580_v14 = vld [vmem:[#allocation5 + $0x54] sm:$0xf0]  ;;  %v579_v15 = vld [vmem:[#allocation5 + $0x54] sm:$0xf] }
  0x15   :  { %194 = vmatpush.bf16.msra.mxu1 %v502_v8  ;;  %v483_v16 = vld [vmem:[#allocation5 + $0x58] sm:$0xf0]  ;;  %v482_v17 = vor.u32 %v580_v14, %v481_v13  ;;  %v473_v19 = vld [vmem:[#allocation5 + $0x40] sm:$0xf]  ;;  %v578_v20 = vld [vmem:[#allocation5 + $0x44] sm:$0xf0] }
  0x16   :  { %v486_v18 = vor.u32 %v579_v15, %v483_v16  ;;  %v577_v21 = vld [vmem:[#allocation5 + $0x44] sm:$0xf]  ;;  %v475_v22 = vld [vmem:[#allocation5 + $0x48] sm:$0xf0]  ;;  %v474_v23 = vor.u32 %v578_v20, %v473_v19  ;;  %v592_v24 = vld [vmem:[#allocation7 + $0x38] sm:$0xff]  ;;  %vm430_vm2 = vcmask 7168  }
  0x17   :  { %v600_v25 = vld [vmem:[#allocation7 + $0x78] sm:$0xff]  ;;  %v478_v26 = vor.u32 %v577_v21, %v475_v22  ;;  %v465_v27 = vld [vmem:[#allocation5 + $0x30] sm:$0xf]  ;;  %v575_v29 = vld [vmem:[#allocation5 + $0x34] sm:$0xf]  ;;  %346 = vmatpush.bf16.msra.mxu2 %v592_v24 }
  0x18   :  { %181 = vmatpush.bf16.msra.mxu0 %v490_v11  ;;  %v576_v28 = vld [vmem:[#allocation5 + $0x34] sm:$0xf0]  ;;  %v467_v30 = vld [vmem:[#allocation5 + $0x38] sm:$0xf0]  ;;  %360 = vmatpush.bf16.msra.mxu3 %v600_v25  ;;  %v591_v31 = vld [vmem:[#allocation7 + $0x30] sm:$0xff] }
  0x19   :  { %195 = vmatpush.bf16.msra.mxu1 %v494_v12  ;;  %v599_v32 = vld [vmem:[#allocation7 + $0x70] sm:$0xff]  ;;  %v466_v33 = vor.u32 %v576_v28, %v465_v27  ;;  %v470_v34 = vor.u32 %v575_v29, %v467_v30  ;;  %v457_v35 = vld [vmem:[#allocation5 + $0x20] sm:$0xf]  ;;  %v574_v36 = vld [vmem:[#allocation5 + $0x24] sm:$0xf0] }
  0x1a   :  { %v573_v37 = vld [vmem:[#allocation5 + $0x24] sm:$0xf]  ;;  %v459_v38 = vld [vmem:[#allocation5 + $0x28] sm:$0xf0]  ;;  %v458_v41 = vor.u32 %v574_v36, %v457_v35  ;;  %v449_v43 = vld [vmem:[#allocation5 + $0x10] sm:$0xf] }
  0x1b   :  { %347 = vmatpush.bf16.msra.mxu2 %v591_v31  ;;  %v590_v39 = vld [vmem:[#allocation7 + $0x28] sm:$0xff]  ;;  %v462_v42 = vor.u32 %v573_v37, %v459_v38  ;;  %v572_v44 = vld [vmem:[#allocation5 + $0x14] sm:$0xf0]  ;;  %v571_v45 = vld [vmem:[#allocation5 + $0x14] sm:$0xf] }
  0x1c   :  { %182 = vmatpush.bf16.msra.mxu0 %v482_v17  ;;  %361 = vmatpush.bf16.msra.mxu3 %v599_v32  ;;  %v598_v40 = vld [vmem:[#allocation7 + $0x68] sm:$0xff]  ;;  %v451_v46 = vld [vmem:[#allocation5 + $0x18] sm:$0xf0]  ;;  %v589_v47 = vld [vmem:[#allocation7 + $0x20] sm:$0xff]  ;;  %v450_v49 = vor.u32 %v572_v44, %v449_v43 }
  0x1d   :  { %196 = vmatpush.bf16.msra.mxu1 %v486_v18  ;;  %v597_v48 = vld [vmem:[#allocation7 + $0x60] sm:$0xff]  ;;  %v454_v50 = vor.u32 %v571_v45, %v451_v46  ;;  %v570_v52 = vld [vmem:[#allocation5 + $0x4] sm:$0xf0]  ;;  %v443_v54 = vld [vmem:[#allocation5 + $0x8] sm:$0xf0] }
  0x1e   :  { %v441_v51 = vld [vmem:[#allocation5] sm:$0xf]  ;;  %v569_v53 = vld [vmem:[#allocation5 + $0x4] sm:$0xf]  ;;  %v75_v56 = vld [vmem:[#allocation3] sm:$0xff] }
  0x1f   :  { %348 = vmatpush.bf16.msra.mxu2 %v590_v39  ;;  %v442_v55 = vor.u32 %v570_v52, %v441_v51  ;;  %v76_v57 = vld [vmem:[#allocation3 + $0x8] sm:$0xff]  ;;  %v446_v58 = vor.u32 %v569_v53, %v443_v54  ;;  %v587_v62 = vld [vmem:[#allocation7 + $0x10] sm:$0xff]  ;;  %v586_v0 = vld [vmem:[#allocation7 + $0x8] sm:$0xff] }
  0x20   :  { %183 = vmatpush.bf16.msra.mxu0 %v474_v23  ;;  %362 = vmatpush.bf16.msra.mxu3 %v598_v40  ;;  %v77_v59 = vpack.c.bf16 %v76_v57, %v75_v56  ;;  %v588_v60 = vld [vmem:[#allocation7 + $0x18] sm:$0xff]  ;;  %v595_v63 = vld [vmem:[#allocation7 + $0x50] sm:$0xff]  ;;  %v594_v1 = vld [vmem:[#allocation7 + $0x48] sm:$0xff] }
  0x21   :  { %197 = vmatpush.bf16.msra.mxu1 %v478_v26  ;;  %v596_v61 = vld [vmem:[#allocation7 + $0x58] sm:$0xff]  ;;  %v585_v2 = vld [vmem:[#allocation7] sm:$0xff]  ;;  %v94_v4 = vld [vmem:[%s773_s2] sm:$0x3] }
  0x22   :  { %v593_v3 = vld [vmem:[#allocation7 + $0x40] sm:$0xff]  ;;  %v96_v7 = vperm.slane %v94_v4, 0  ;;  %v97_v8 = vperm.slane %v94_v4, 1  ;;  %v608_v21 = vld [vmem:[%s775_s4] ss:$0 sm:$0xff] }
  0x23   :  { %349 = vmatpush.bf16.msra.mxu2 %v589_v47  ;;  %v609_v26 = vld [vmem:[%s776_s5] ss:$0 sm:$0xff] }
  0x24   :  { %184 = vmatpush.bf16.msra.mxu0 %v466_v33  ;;  %363 = vmatpush.bf16.msra.mxu3 %v597_v48  ;;  %v610_v35 = vld [vmem:[#allocation2] ss:$0 sm:$0xff] }
  0x25   :  { %198 = vmatpush.bf16.msra.mxu1 %v470_v34 }
  0x27   :  { %350 = vmatpush.bf16.msra.mxu2 %v588_v60 }
  0x28   :  { %185 = vmatpush.bf16.msra.mxu0 %v458_v41  ;;  %364 = vmatpush.bf16.msra.mxu3 %v596_v61 }
  0x29   :  { %199 = vmatpush.bf16.msra.mxu1 %v462_v42 }
  0x2b   :  { %351 = vmatpush.bf16.msra.mxu2 %v587_v62 }
  0x2c   :  { %186 = vmatpush.bf16.msra.mxu0 %v450_v49  ;;  %365 = vmatpush.bf16.msra.mxu3 %v595_v63 }
  0x2d   :  { %200 = vmatpush.bf16.msra.mxu1 %v454_v50 }
  0x2f   :  { %352 = vmatpush.bf16.msra.mxu2 %v586_v0 }
  0x30   :  { %187 = vmatpush.bf16.msra.mxu0 %v442_v55  ;;  %366 = vmatpush.bf16.msra.mxu3 %v594_v1 }
  0x31   :  { %201 = vmatpush.bf16.msra.mxu1 %v446_v58 }
  0x33   :  { %188 = vmatmul.bf16.vlgmr.msra.gmra.mxu0 %v77_v59  ;;  %353 = vmatpush.bf16.msra.mxu2 %v585_v2 }
  0x34   :  { %202 = vmatmul.bf16.vlgmr.msra.gmra.mxu1 %v77_v59  ;;  %367 = vmatpush.bf16.msra.mxu3 %v593_v3 }
  0xb0   :  { %v189_v5 = vpop.f32.mrf.mxu0 }
  0xb1   :  { %v203_v6 = vpop.f32.mrf.mxu1  ;;  %v190_v9 = vadd.f32 %v189_v5, %v96_v7 }
  0xb2   :  { %v204_v10 = vadd.f32 %v203_v6, %v97_v8 }
  0xb3   :  { %v208_v15 = vmax.f32 %v190_v9, 0.0 }
  0xb4   :  { %v209_v17 = vmax.f32 %v204_v10, 0.0 }
  0xb8   :  { %v191_v11 = vpop.f32.mrf.mxu0 }
  0xb9   :  { %v192_v12 = vadd.f32 %v191_v11, %v96_v7  ;;  %v205_v13 = vpop.f32.mrf.mxu1 }
  0xba   :  { %v206_v14 = vadd.f32 %v205_v13, %v97_v8 }
  0xbb   :  { %v210_v16 = vmax.f32 %v192_v12, 0.0 }
  0xbc   :  { %v211_v18 = vmax.f32 %v206_v14, 0.0 }
  0xbd   :  { %v212_v19 = vpack.c.bf16 %v210_v16, %v208_v15 }
  0xbe   :  { %v213_v20 = vpack.c.bf16 %v211_v18, %v209_v17 }
  0xbf   :  { %354 = vmatmul.bf16.vlgmr.msra.gmra.mxu2 %v212_v19 }
  0xc0   :  { %368 = vmatmul.bf16.vlgmr.msra.gmra.mxu3 %v213_v20 }
 0x142   :  { %v355_v22 = vpop.f32.mrf.mxu2 }
 0x143   :  { %v356_v23 = vadd.f32 %v608_v21, %v355_v22  ;;  %v369_v24 = vpop.f32.mrf.mxu3 }
 0x145   :  { %v370_v25 = vadd.f32 %v369_v24, %v356_v23 }
 0x147   :  { %v374_v27 = vmax.f32 %v370_v25, 0.0 }
 0x149   :  { %v380_v28 = vmul.f32 %v609_v26, %v374_v27 }
 0x14a   :  { %v357_v29 = vpop.f32.mrf.mxu2 }
 0x14b   :  { %v358_v30 = vadd.f32 %v608_v21, %v357_v29  ;;  %382 = vadd.xlane.f32.xlu0 %v380_v28  ;;  %v371_v31 = vpop.f32.mrf.mxu3 }
 0x14d   :  { %v372_v32 = vadd.f32 %v371_v31, %v358_v30 }
 0x14f   :  { %v375_v33 = vmax.f32 %v372_v32, 0.0 }
 0x151   :  { %v381_v34 = vmul.f32 %v609_v26, %v375_v33 }
 0x153   :  { %384 = vadd.xlane.f32.xlu0 %v381_v34 }
 0x1be   :  { %v383_v36 = vpop.xlane.xlu0 %382 }
 0x1bf   :  { %v390_v37 = vadd.f32 %v610_v35, %v383_v36 }
 0x1c1   :  { %v567_v38 = vmul.f32 -1.442695, %v390_v37 }
 0x1c3   :  { %611 = vpow2.f32 %v567_v38 }
 0x1c6   :  { %v385_v39 = vpop.xlane.xlu0 %384 }
 0x1c7   :  { %v391_v40 = vadd.f32 %v610_v35, %v385_v39 }
 0x1c9   :  { %v612_v41 = vpop.eup %611  ;;  %v568_v42 = vmul.f32 -1.442695, %v391_v40 }
 0x1ca   :  { %v398_v43 = vadd.f32 1.0, %v612_v41 }
 0x1cb   :  { %613 = vpow2.f32 %v568_v42 }
 0x1cc   :  { %615 = vrcp.f32 %v398_v43  ;;  %v411_v49 = vand.u32 2147483648, %v398_v43  ;;  %v409_v51 = vand.u32 2147483647, %v398_v43  ;;  %vm405_vm1 = vweird.f32 %v398_v43 }
 0x1ce   :  { %v412_v54 = vor.u32 1.1754944e-38, %v411_v49  ;;  %vm410_vm4 = vcmp.eq.f32.partialorder %v409_v51, 8.507059e+37 }
 0x1d1   :  { %v614_v44 = vpop.eup %613 }
 0x1d2   :  { %v616_v45 = vpop.eup %615  ;;  %v399_v46 = vadd.f32 1.0, %v614_v44 }
 0x1d3   :  { %v401_v47 = vmul.f32 %v616_v45, %v398_v43  ;;  %vm406_vm0 = vweird.f32 %v616_v45 }
 0x1d4   :  { %617 = vrcp.f32 %v399_v46  ;;  %vm407_vm3 = vmor %vm405_vm1, %vm406_vm0  ;;  %v426_v59 = vand.u32 2147483648, %v399_v46  ;;  %v424_v61 = vand.u32 2147483647, %v399_v46  ;;  %vm420_vm6 = vweird.f32 %v399_v46 }
 0x1d5   :  { %v402_v48 = vsub.f32 1.0, %v401_v47 }
 0x1d6   :  { %v427_v63 = vor.u32 1.1754944e-38, %v426_v59  ;;  %vm425_vm8 = vcmp.eq.f32.partialorder %v424_v61, 8.507059e+37 }
 0x1d7   :  { %v403_v50 = vmul.f32 %v616_v45, %v402_v48 }
 0x1d9   :  { %v404_v52 = vadd.f32 %v616_v45, %v403_v50 }
 0x1da   :  { %v618_v53 = vpop.eup %617 }
 0x1db   :  { %v408_v55 = vsel %vm407_vm3, %v616_v45, %v404_v52  ;;  %v416_v56 = vmul.f32 %v618_v53, %v399_v46  ;;  %vm421_vm5 = vweird.f32 %v618_v53 }
 0x1dc   :  { %v413_v57 = vsel %vm410_vm4, %v412_v54, %v408_v55  ;;  %vm422_vm7 = vmor %vm420_vm6, %vm421_vm5 }
 0x1dd   :  { %431 = vst.msk [vmem:[%s778_s7] sm:$0xff] %vm430_vm2, %v413_v57  ;;  %v417_v58 = vsub.f32 1.0, %v416_v56 }
 0x1df   :  { %v418_v60 = vmul.f32 %v618_v53, %v417_v58 }
 0x1e1   :  { %v419_v62 = vadd.f32 %v618_v53, %v418_v60 }
 0x1e3   :  { %v423_v0 = vsel %vm422_vm7, %v618_v53, %v419_v62 }
 0x1e4   :  { %v428_v1 = vsel %vm425_vm8, %v427_v63, %v423_v0 }
 0x1e5   :  { %432 = vst.msk [vmem:[%s778_s7 + $0x8] sm:$0xff] %vm430_vm2, %v428_v1 }
 0x1e6   :  { %437 = vsyncpa [#allocation4], 1 }
 0x1e7   :  { %438 = vsyncpa [#allocation6], 1 }

</bundles_post_ra>
